<compile_context>
chip_gen: v7x
topology: tpu7x:2x2x1
jax: 0.10.0
libtpu: 0.0.40
codegen_flags: <defaults>
</compile_context>

<pallas_src>
import functools

import jax
import jax.numpy as jnp
from jax.experimental import pallas as pl
from jax.experimental.pallas import tpu as pltpu


def _round_up(x: int, m: int) -> int:
    return (x + m - 1) // m * m


def _sublane_pack(dtype) -> int:
    # Minimum sublane extent for a packed vreg tile: 8 (f32), 16 (bf16), 32 (int8/fp8).
    return {4: 8, 2: 16, 1: 32}.get(jnp.dtype(dtype).itemsize, 8)


def _vmem_budget_bytes() -> int:
    cap = 64 << 20  # conservative default = v7x per-TC physical VMEM
    try:
        cap = int(pltpu.get_tpu_info().vmem_capacity_bytes)
    except Exception:
        pass
    # Leave headroom for Mosaic internal scratch.
    return max(int(0.85 * cap), 16 << 20)


def _is_multi_core_chip() -> bool:
    # Chips with >1 TensorCore sharing the "parallel" grid axis.
    try:
        kind = jax.devices()[0].device_kind.lower()
    except Exception:
        return False
    return any(tag in kind for tag in ("v4", "v5p", "v7"))


def _block_footprint(tm: int, te: int, dh_pad: int, act_sz: int, w_sz: int) -> int:
    """Double-buffered blocks (x, W_gate, W_up, W_down, out) + f32 accumulator."""
    bytes_x = tm * dh_pad * act_sz
    bytes_w = (2 * dh_pad * te + te * dh_pad) * w_sz
    bytes_out = tm * dh_pad * act_sz
    bytes_acc = tm * dh_pad * 4
    return 2 * (bytes_x + bytes_w + bytes_out) + bytes_acc


def _select_tiles(n, dh_pad, de_pad, act_sz, w_sz, sub, budget, multi_core):
    # te candidates: divisors of de_pad (so no extra expert-axis padding),
    # largest first -> prefers fully-resident weights / fewest k steps.
    te_opts = sorted(
        {t for t in (128, 256, 384, 512, 768, 1024, de_pad)
         if t <= de_pad and de_pad % t == 0},
        reverse=True,
    )
    n_min = _round_up(max(n, 1), sub)
    tm_base = (512, 384, 256, 192, 128, 96, 64, 48, 32, 16, 8)
    tm_opts = sorted(
        {t for t in tm_base if t % sub == 0 and t <= n_min}
        | ({n_min} if n_min <= 512 else set()),
        reverse=True,
    )
    if not tm_opts:
        tm_opts = [n_min]

    def tm_score(t):
        n_pad = _round_up(max(n, 1), t)
        waste = n_pad - n
        single = 0 if (n_pad // t) >= 2 else 1
        # Multi-core chips: first make sure both cores have a row block,
        # then minimize padding.  Single-core: minimize padding first.
        return (single, waste, -t) if multi_core else (waste, single, -t)

    for te in te_opts:
        feasible = [t for t in tm_opts
                    if _block_footprint(t, te, dh_pad, act_sz, w_sz) <= budget]
        if feasible:
            return min(feasible, key=tm_score), te
    # Nothing fits the budget cleanly: use the smallest blocks and let the
    # vmem limit clamp things.
    return min(tm_opts), 128


def expert_kernel(x_ref, wg_ref, wu_ref, wd_ref, o_ref, acc_ref):
    """Grid = (token-block i [parallel], d_expert-block k [reduction])."""
    k = pl.program_id(1)

    @pl.when(k == 0)
    def _():
        acc_ref[...] = jnp.zeros_like(acc_ref)

    x = x_ref[...]                                                    # [tm, dh]
    g = jnp.dot(x, wg_ref[...], preferred_element_type=jnp.float32)  # [tm, te]
    up = jnp.dot(x, wu_ref[...], preferred_element_type=jnp.float32)
    # SiLU(g) * up, rounded once to the weight dtype for the MXU down-proj.
    h = (g * jax.nn.sigmoid(g) * up).astype(wd_ref.dtype)            # [tm, te]
    acc_ref[...] += jnp.dot(h, wd_ref[...], preferred_element_type=jnp.float32)

    @pl.when(k == pl.num_programs(1) - 1)
    def _():
        o_ref[...] = acc_ref[...].astype(o_ref.dtype)


@functools.partial(jax.jit, static_argnames=("tm", "te", "compute_dtype"))
def expert_forward(x, w_gate, w_up, w_down, *, tm=None, te=None, compute_dtype=None):
    """x: [N, d_hidden] -> [N, d_hidden].

    tm / te: optional explicit token / d_expert tiles (auto-selected if None).
    compute_dtype: optional MXU dtype (e.g. jnp.bfloat16); accumulation stays
    f32 and the result is cast back to x.dtype.
    """
    out_dtype = x.dtype
    if compute_dtype is not None:
        x = x.astype(compute_dtype)
        w_gate = w_gate.astype(compute_dtype)
        w_up = w_up.astype(compute_dtype)
        w_down = w_down.astype(compute_dtype)

    n, d_hidden = x.shape
    d_expert = w_gate.shape[1]
    act_sz = jnp.dtype(x.dtype).itemsize
    w_sz = jnp.dtype(w_gate.dtype).itemsize
    sub = max(_sublane_pack(x.dtype), _sublane_pack(w_gate.dtype))

    dh_pad = _round_up(d_hidden, 128)
    de_pad = _round_up(d_expert, 128)

    budget = _vmem_budget_bytes()
    multi_core = _is_multi_core_chip()
    auto_tm, auto_te = _select_tiles(n, dh_pad, de_pad, act_sz, w_sz, sub,
                                     budget, multi_core)
    tm_eff = auto_tm if tm is None else min(_round_up(tm, sub),
                                            _round_up(max(n, 1), sub))
    te_eff = auto_te if te is None else min(_round_up(te, 128), de_pad)
    de_pad = _round_up(de_pad, te_eff)   # keep te_eff | de_pad
    n_pad = _round_up(max(n, 1), tm_eff)

    # Zero padding is exact for this computation (SiLU(0)*0 = 0, zero rows /
    # columns contribute nothing).  Skip the copies when already aligned.
    def _pad2(a, r, c):
        dr, dc = r - a.shape[0], c - a.shape[1]
        return a if (dr == 0 and dc == 0) else jnp.pad(a, ((0, dr), (0, dc)))

    xp = _pad2(x, n_pad, dh_pad)
    wgp = _pad2(w_gate, dh_pad, de_pad)
    wup = _pad2(w_up, dh_pad, de_pad)
    wdp = _pad2(w_down, de_pad, dh_pad)

    grid = (n_pad // tm_eff, de_pad // te_eff)
    grid_i, grid_k = grid

    needed = _block_footprint(tm_eff, te_eff, dh_pad, act_sz, w_sz)
    vmem_limit = int(min(budget, max(needed + needed // 4 + (1 << 20), 4 << 20)))

    # Weights are re-read once per token row block unless the k axis has a
    # single step (then the block index never changes and the DMA is skipped).
    weight_passes = 1 if grid_k == 1 else grid_i
    weight_bytes = (2 * dh_pad * de_pad + de_pad * dh_pad) * w_sz
    cost = pl.CostEstimate(
        flops=6 * n_pad * dh_pad * de_pad,          # 3 matmuls
        transcendentals=n_pad * de_pad,             # sigmoid in SiLU
        bytes_accessed=(2 * n_pad * dh_pad * act_sz # x in + out
                        + weight_passes * weight_bytes),
    )

    out = pl.pallas_call(
        expert_kernel,
        out_shape=jax.ShapeDtypeStruct((n_pad, dh_pad), out_dtype),
        grid_spec=pltpu.PrefetchScalarGridSpec(
            num_scalar_prefetch=0,
            grid=grid,
            in_specs=[
                pl.BlockSpec((tm_eff, dh_pad), lambda i, k: (i, 0)),   # x row-block
                pl.BlockSpec((dh_pad, te_eff), lambda i, k: (0, k)),   # W_gate tile
                pl.BlockSpec((dh_pad, te_eff), lambda i, k: (0, k)),   # W_up tile
                pl.BlockSpec((te_eff, dh_pad), lambda i, k: (k, 0)),   # W_down tile
            ],
            out_specs=pl.BlockSpec((tm_eff, dh_pad), lambda i, k: (i, 0)),
            scratch_shapes=[pltpu.VMEM((tm_eff, dh_pad), jnp.float32)],
        ),
        compiler_params=pltpu.CompilerParams(
            dimension_semantics=("parallel", "arbitrary"),
            vmem_limit_bytes=vmem_limit,
        ),
        cost_estimate=cost,
    )(xp, wgp, wup, wdp)

    return out[:n, :d_hidden]


def expert_reference(x, w_gate, w_up, w_down):
    """Pure-JAX reference mirroring the PyTorch forward exactly."""
    g = x @ w_gate
    gate = g * jax.nn.sigmoid(g)      # nn.SiLU
    return (gate * (x @ w_up)) @ w_down


def _make_inputs(key, n, d_hidden, d_expert, dtype=jnp.float32):
    kx, kg, ku, kd = jax.random.split(key, 4)
    x = jax.random.normal(kx, (n, d_hidden), dtype=dtype)
    w_gate = jax.random.normal(kg, (d_hidden, d_expert), dtype=dtype) * (d_hidden ** -0.5)
    w_up = jax.random.normal(ku, (d_hidden, d_expert), dtype=dtype) * (d_hidden ** -0.5)
    w_down = jax.random.normal(kd, (d_expert, d_hidden), dtype=dtype) * (d_expert ** -0.5)
    return x, w_gate, w_up, w_down


if __name__ == "__main__":
    key = jax.random.PRNGKey(0)

    # Small config consistent with the module: d_hidden=32, d_expert=64, 8 tokens.
    x, w_gate, w_up, w_down = _make_inputs(key, n=8, d_hidden=32, d_expert=64)
    out = jax.block_until_ready(expert_forward(x, w_gate, w_up, w_down))
    ref = expert_reference(x, w_gate, w_up, w_down)
    assert out.shape == (8, 32)
    assert jnp.allclose(out, ref, atol=1e-3, rtol=1e-3), "mismatch vs reference (small)"

    # Larger, awkwardly-sized config exercising multi-block grid + padding.
    k2 = jax.random.PRNGKey(1)
    x2, wg2, wu2, wd2 = _make_inputs(k2, n=300, d_hidden=160, d_expert=384)
    out2 = jax.block_until_ready(expert_forward(x2, wg2, wu2, wd2))
    ref2 = expert_reference(x2, wg2, wu2, wd2)
    assert out2.shape == (300, 160)
    assert jnp.allclose(out2, ref2, atol=2e-3, rtol=2e-3), "mismatch vs reference (large)"

    # Same problem with explicit tiles (forces a multi-step k reduction).
    out3 = jax.block_until_ready(expert_forward(x2, wg2, wu2, wd2, tm=128, te=128))
    assert jnp.allclose(out3, ref2, atol=2e-3, rtol=2e-3), "mismatch vs reference (tiled)"

    # bf16 MXU path (accumulation stays f32); looser tolerance vs f32 reference.
    out4 = jax.block_until_ready(
        expert_forward(x2, wg2, wu2, wd2, compute_dtype=jnp.bfloat16))
    assert out4.dtype == x2.dtype
    assert jnp.allclose(out4, ref2, atol=1e-1, rtol=1e-1), "mismatch vs reference (bf16)"

    print("KERNEL_OK")
</pallas_src>

<mosaic_0001>
module attributes {stable_mosaic.version = 11 : i64} {
  func.func @expert_kernel(%arg0: i32, %arg1: i32, %arg2: memref<8x128xf32, #tpu.memory_space<vmem>>, %arg3: memref<128x128xf32, #tpu.memory_space<vmem>>, %arg4: memref<128x128xf32, #tpu.memory_space<vmem>>, %arg5: memref<128x128xf32, #tpu.memory_space<vmem>>, %arg6: memref<8x128xf32, #tpu.memory_space<vmem>>, %arg7: memref<8x128xf32, #tpu.memory_space<vmem>>) attributes {dimension_semantics = [#tpu.dimension_semantics<parallel>, #tpu.dimension_semantics<arbitrary>], iteration_bounds = array<i64: 1, 1>, scalar_prefetch = 0 : i64, scratch_operands = 1 : i64, tpu.core_type = #tpu.core_type<tc>, window_params = [{transform_indices = @transform_0, window_bounds = array<i64: 8, 128>}, {transform_indices = @transform_1, window_bounds = array<i64: 128, 128>}, {transform_indices = @transform_2, window_bounds = array<i64: 128, 128>}, {transform_indices = @transform_3, window_bounds = array<i64: 128, 128>}, {transform_indices = @transform_4, window_bounds = array<i64: 8, 128>}]} {
    %c0_i32 = arith.constant 0 : i32
    %0 = arith.cmpi eq, %arg1, %c0_i32 : i32
    %1 = arith.extui %0 : i1 to i32
    %c0_i32_0 = arith.constant 0 : i32
    %2 = arith.cmpi ne, %1, %c0_i32_0 : i32
    scf.if %2 {
      %cst_17 = arith.constant 0.000000e+00 : f32
      %23 = vector.broadcast %cst_17 : f32 to vector<8x128xf32>
      %c0_18 = arith.constant 0 : index
      %c0_19 = arith.constant 0 : index
      %24 = vector.load %arg7[%c0_18, %c0_19] : memref<8x128xf32, #tpu.memory_space<vmem>>, vector<8x128xf32>
      tpu.vector_store %arg7[%c0_18, %c0_19], %23 {strides = array<i32>} : memref<8x128xf32, #tpu.memory_space<vmem>>, vector<8x128xf32>,
    } else {
    }
    %c0 = arith.constant 0 : index
    %c0_1 = arith.constant 0 : index
    %3 = vector.load %arg2[%c0, %c0_1] : memref<8x128xf32, #tpu.memory_space<vmem>>, vector<8x128xf32>
    %c0_2 = arith.constant 0 : index
    %c0_3 = arith.constant 0 : index
    %4 = vector.load %arg3[%c0_2, %c0_3] : memref<128x128xf32, #tpu.memory_space<vmem>>, vector<128x128xf32>
    %cst = arith.constant dense<0.000000e+00> : vector<8x128xf32>
    %5 = tpu.matmul %3, %4, %cst {dimension_numbers = #tpu.dot_dimension_numbers<[1], [0], [0], [1], [0, 0, 1, 1], [], []>} : vector<8x128xf32>, vector<128x128xf32>, vector<8x128xf32> -> vector<8x128xf32>
    %c0_4 = arith.constant 0 : index
    %c0_5 = arith.constant 0 : index
    %6 = vector.load %arg4[%c0_4, %c0_5] : memref<128x128xf32, #tpu.memory_space<vmem>>, vector<128x128xf32>
    %cst_6 = arith.constant dense<0.000000e+00> : vector<8x128xf32>
    %7 = tpu.matmul %3, %6, %cst_6 {dimension_numbers = #tpu.dot_dimension_numbers<[1], [0], [0], [1], [0, 0, 1, 1], [], []>} : vector<8x128xf32>, vector<128x128xf32>, vector<8x128xf32> -> vector<8x128xf32>
    %8 = arith.negf %5 : vector<8x128xf32>
    %9 = math.exp %8 : vector<8x128xf32>
    %cst_7 = arith.constant 1.000000e+00 : f32
    %10 = vector.broadcast %cst_7 : f32 to vector<8x128xf32>
    %11 = arith.addf %10, %9 : vector<8x128xf32>
    %12 = arith.divf %10, %11 : vector<8x128xf32>
    %13 = arith.mulf %5, %12 : vector<8x128xf32>
    %14 = arith.mulf %13, %7 : vector<8x128xf32>
    %c0_8 = arith.constant 0 : index
    %c0_9 = arith.constant 0 : index
    %15 = vector.load %arg7[%c0_8, %c0_9] : memref<8x128xf32, #tpu.memory_space<vmem>>, vector<8x128xf32>
    %c0_10 = arith.constant 0 : index
    %c0_11 = arith.constant 0 : index
    %16 = vector.load %arg5[%c0_10, %c0_11] : memref<128x128xf32, #tpu.memory_space<vmem>>, vector<128x128xf32>
    %cst_12 = arith.constant dense<0.000000e+00> : vector<8x128xf32>
    %17 = tpu.matmul %14, %16, %cst_12 {dimension_numbers = #tpu.dot_dimension_numbers<[1], [0], [0], [1], [0, 0, 1, 1], [], []>} : vector<8x128xf32>, vector<128x128xf32>, vector<8x128xf32> -> vector<8x128xf32>
    %18 = arith.addf %15, %17 : vector<8x128xf32>
    %c0_13 = arith.constant 0 : index
    %c0_14 = arith.constant 0 : index
    %19 = vector.load %arg7[%c0_13, %c0_14] : memref<8x128xf32, #tpu.memory_space<vmem>>, vector<8x128xf32>
    tpu.vector_store %arg7[%c0_13, %c0_14], %18 {strides = array<i32>} : memref<8x128xf32, #tpu.memory_space<vmem>>, vector<8x128xf32>,
    %c0_i32_15 = arith.constant 0 : i32
    %20 = arith.cmpi eq, %arg1, %c0_i32_15 : i32
    %21 = arith.extui %20 : i1 to i32
    %c0_i32_16 = arith.constant 0 : i32
    %22 = arith.cmpi ne, %21, %c0_i32_16 : i32
    scf.if %22 {
      %c0_17 = arith.constant 0 : index
      %c0_18 = arith.constant 0 : index
      %23 = vector.load %arg7[%c0_17, %c0_18] : memref<8x128xf32, #tpu.memory_space<vmem>>, vector<8x128xf32>
      %c0_19 = arith.constant 0 : index
      %c0_20 = arith.constant 0 : index
      %24 = vector.load %arg6[%c0_19, %c0_20] : memref<8x128xf32, #tpu.memory_space<vmem>>, vector<8x128xf32>
      tpu.vector_store %arg6[%c0_19, %c0_20], %23 {strides = array<i32>} : memref<8x128xf32, #tpu.memory_space<vmem>>, vector<8x128xf32>,
    } else {
    }
    return
  }
  func.func @transform_0(%arg0: i32, %arg1: i32) -> (i32, i32) {
    %c0_i32 = arith.constant 0 : i32
    %c0_i32_0 = arith.constant 0 : i32
    return %arg0, %c0_i32 : i32, i32
  }
  func.func @transform_1(%arg0: i32, %arg1: i32) -> (i32, i32) {
    %c0_i32 = arith.constant 0 : i32
    %c0_i32_0 = arith.constant 0 : i32
    return %c0_i32, %arg1 : i32, i32
  }
  func.func @transform_2(%arg0: i32, %arg1: i32) -> (i32, i32) {
    %c0_i32 = arith.constant 0 : i32
    %c0_i32_0 = arith.constant 0 : i32
    return %c0_i32, %arg1 : i32, i32
  }
  func.func @transform_3(%arg0: i32, %arg1: i32) -> (i32, i32) {
    %c0_i32 = arith.constant 0 : i32
    %c0_i32_0 = arith.constant 0 : i32
    return %arg1, %c0_i32 : i32, i32
  }
  func.func @transform_4(%arg0: i32, %arg1: i32) -> (i32, i32) {
    %c0_i32 = arith.constant 0 : i32
    %c0_i32_0 = arith.constant 0 : i32
    return %arg0, %c0_i32 : i32, i32
  }
}

</mosaic_0001>

<bundles_post_ra>
// kernel: expert_forward.1
= control target key start
LH: loop header
LB: loop body
LE: loop exit
PB: predicated region body
PF: predicated region fallthrough
CT: control target
= control target key end

     0   :  { %v573_v3 = vmov 0.0|0.0   ;;  %vm574_vm0 = vmmov 0   ;;  %v575_v6 = vmov 0.0   ;;  %s791_s0 = inlined_call_operand.vmem [shape: f32[8,128], index: 0, kind: input, shape index: {}]   ;;  %s792_s1 = inlined_call_operand.vmem [shape: f32[128,128], index: 1, kind: input, shape index: {}]   ;;  %s793_s2 = inlined_call_operand.vmem [shape: f32[128,128], index: 2, kind: input, shape index: {}]   ;;  %s794_s3 = inlined_call_operand.vmem [shape: f32[128,128], index: 3, kind: input, shape index: {}]   ;;  %s795_s4 = inlined_call_operand.hbm [shape: f32[8,128], index: 4, kind: output, shape index: {}]  }
   0x1   :  { %v24_v0 = vld [vmem:[%s792_s1] sm:$0xff]  ;;  %v25_v1 = vld [vmem:[%s792_s1 + $0x8] sm:$0xff]  ;;  %v26_v2 = vld [vmem:[%s792_s1 + $0x10] sm:$0xff]  ;;  %469 = vmatprep.subr.bf16.mxu0 %v573_v3  ;;  %493 = vmatprep.subr.bf16.mxu1 %v573_v3 }
   0x2   :  { %v470_v4 = vpack.c.bf16 %v25_v1, %v24_v0  ;;  %v27_v5 = vld [vmem:[%s792_s1 + $0x18] sm:$0xff]  ;;  %396 = vmatprep.mubr.msk.f32.mxu0 %vm574_vm0, %v575_v6  ;;  %431 = vmatprep.mubr.msk.f32.mxu1 %vm574_vm0, %v575_v6  ;;  %v28_v8 = vld [vmem:[%s792_s1 + $0x20] sm:$0xff]  ;;  %v29_v9 = vld [vmem:[%s792_s1 + $0x28] sm:$0xff] }
   0x3   :  { %v473_v7 = vpack.c.bf16 %v27_v5, %v26_v2  ;;  %v110_v10 = vld [vmem:[%s793_s2] sm:$0xff]  ;;  %v111_v11 = vld [vmem:[%s793_s2 + $0x8] sm:$0xff]  ;;  %v112_v13 = vld [vmem:[%s793_s2 + $0x10] sm:$0xff]  ;;  %v476_v15 = vpack.c.bf16 %v29_v9, %v28_v8 }
   0x4   :  { %471 = vmatpush3.bf16.msra.mxu0 %v470_v4  ;;  %v494_v12 = vpack.c.bf16 %v111_v11, %v110_v10  ;;  %v113_v14 = vld [vmem:[%s793_s2 + $0x18] sm:$0xff]  ;;  %v30_v16 = vld [vmem:[%s792_s1 + $0x30] sm:$0xff]  ;;  %v114_v19 = vld [vmem:[%s793_s2 + $0x20] sm:$0xff] }
   0x5   :  { %472 = vmatprep.subr.bf16.mxu0 %v573_v3  ;;  %v31_v17 = vld [vmem:[%s792_s1 + $0x38] sm:$0xff]  ;;  %v497_v18 = vpack.c.bf16 %v113_v14, %v112_v13  ;;  %v115_v20 = vld [vmem:[%s793_s2 + $0x28] sm:$0xff] }
   0x6   :  { %495 = vmatpush3.bf16.msra.mxu1 %v494_v12  ;;  %v479_v21 = vpack.c.bf16 %v31_v17, %v30_v16 }
   0x7   :  { %496 = vmatprep.subr.bf16.mxu1 %v573_v3 }
   0x8   :  { %474 = vmatpush3.bf16.msra.mxu0 %v473_v7 }
   0x9   :  { %475 = vmatprep.subr.bf16.mxu0 %v573_v3 }
   0xc   :  { %477 = vmatpush3.bf16.msra.mxu0 %v476_v15 }
   0xd   :  { %9 = vsyncpa [#allocation4], 0  ;;  %478 = vmatprep.subr.bf16.mxu0 %v573_v3  ;;  %v32_v22 = vld [vmem:[%s792_s1 + $0x40] sm:$0xff]  ;;  %v33_v23 = vld [vmem:[%s792_s1 + $0x48] sm:$0xff]  ;;  %498 = vmatpush3.bf16.msra.mxu1 %v497_v18  ;;  %v500_v24 = vpack.c.bf16 %v115_v20, %v114_v19  ;;  %s576_s30 = smov [#allocation3]  }
   0xe   :  { %499 = vmatprep.subr.bf16.mxu1 %v573_v3  ;;  %v116_v25 = vld [vmem:[%s793_s2 + $0x30] sm:$0xff]  ;;  %v117_v26 = vld [vmem:[%s793_s2 + $0x38] sm:$0xff]  ;;  %v482_v27 = vpack.c.bf16 %v33_v23, %v32_v22  ;;  %v118_v31 = vld [vmem:[%s793_s2 + $0x40] sm:$0xff] }
   0xf   :  { %v34_v28 = vld [vmem:[%s792_s1 + $0x50] sm:$0xff]  ;;  %v35_v29 = vld [vmem:[%s792_s1 + $0x58] sm:$0xff]  ;;  %v503_v30 = vpack.c.bf16 %v117_v26, %v116_v25  ;;  %v119_v32 = vld [vmem:[%s793_s2 + $0x48] sm:$0xff] }
  0x10   :  { %480 = vmatpush3.bf16.msra.mxu0 %v479_v21  ;;  %v485_v33 = vpack.c.bf16 %v35_v29, %v34_v28  ;;  %v36_v34 = vld [vmem:[%s792_s1 + $0x60] sm:$0xff]  ;;  %v37_v35 = vld [vmem:[%s792_s1 + $0x68] sm:$0xff]  ;;  %v506_v36 = vpack.c.bf16 %v119_v32, %v118_v31  ;;  %v120_v37 = vld [vmem:[%s793_s2 + $0x50] sm:$0xff] }
  0x11   :  { %481 = vmatprep.subr.bf16.mxu0 %v573_v3  ;;  %501 = vmatpush3.bf16.msra.mxu1 %v500_v24  ;;  %v121_v38 = vld [vmem:[%s793_s2 + $0x58] sm:$0xff]  ;;  %v488_v39 = vpack.c.bf16 %v37_v35, %v36_v34  ;;  %v38_v40 = vld [vmem:[%s792_s1 + $0x70] sm:$0xff]  ;;  %v122_v43 = vld [vmem:[%s793_s2 + $0x60] sm:$0xff] }
  0x12   :  { %502 = vmatprep.subr.bf16.mxu1 %v573_v3  ;;  %v39_v41 = vld [vmem:[%s792_s1 + $0x78] sm:$0xff]  ;;  %v509_v42 = vpack.c.bf16 %v121_v38, %v120_v37  ;;  %v123_v44 = vld [vmem:[%s793_s2 + $0x68] sm:$0xff]  ;;  %v124_v47 = vld [vmem:[%s793_s2 + $0x70] sm:$0xff] }
  0x13   :  { %v491_v45 = vpack.c.bf16 %v39_v41, %v38_v40  ;;  %v512_v46 = vpack.c.bf16 %v123_v44, %v122_v43  ;;  %v125_v48 = vld [vmem:[%s793_s2 + $0x78] sm:$0xff]  ;;  %v23_v49 = vld [vmem:[%s791_s0] sm:$0xff]  ;;  %v206_v52 = vld [vmem:[%s794_s3 + $0x8] sm:$0xff]  ;;  %s304_s0 = sshll.u32 %s576_s30, 4  ;;  %s305_s0 = int_to_ptr.vmem [resolvable:$true] %s304_s0 }
  0x14   :  { %483 = vmatpush3.bf16.msra.mxu0 %v482_v27  ;;  %v515_v50 = vpack.c.bf16 %v125_v48, %v124_v47  ;;  %v205_v51 = vld [vmem:[%s794_s3] sm:$0xff]  ;;  %v207_v54 = vld [vmem:[%s794_s3 + $0x10] sm:$0xff]  ;;  %v208_v55 = vld [vmem:[%s794_s3 + $0x18] sm:$0xff]  ;;  %p554_p1 = scmp.lt.s32.totalorder %s305_s0, %s305_s0 }
  0x15   :  { %484 = vmatprep.subr.bf16.mxu0 %v573_v3  ;;  %504 = vmatpush3.bf16.msra.mxu1 %v503_v30  ;;  %v518_v53 = vpack.c.bf16 %v206_v52, %v205_v51  ;;  %v521_v56 = vpack.c.bf16 %v208_v55, %v207_v54  ;;  %v209_v57 = vld [vmem:[%s794_s3 + $0x20] sm:$0xff]  ;;  %v210_v58 = vld [vmem:[%s794_s3 + $0x28] sm:$0xff]  ;;  %v211_v60 = vld [vmem:[%s794_s3 + $0x30] sm:$0xff] }
  0x16   :  { %505 = vmatprep.subr.bf16.mxu1 %v573_v3  ;;  %v524_v59 = vpack.c.bf16 %v210_v58, %v209_v57  ;;  %v212_v61 = vld [vmem:[%s794_s3 + $0x38] sm:$0xff]  ;;  %v213_v63 = vld [vmem:[%s794_s3 + $0x40] sm:$0xff]  ;;  %v214_v0 = vld [vmem:[%s794_s3 + $0x48] sm:$0xff] }
  0x17   :  { %v527_v62 = vpack.c.bf16 %v212_v61, %v211_v60  ;;  %v530_v1 = vpack.c.bf16 %v214_v0, %v213_v63  ;;  %v215_v2 = vld [vmem:[%s794_s3 + $0x50] sm:$0xff]  ;;  %v216_v4 = vld [vmem:[%s794_s3 + $0x58] sm:$0xff]  ;;  %v218_v7 = vld [vmem:[%s794_s3 + $0x68] sm:$0xff] }
  0x18   :  { %486 = vmatpush3.bf16.msra.mxu0 %v485_v33  ;;  %v533_v5 = vpack.c.bf16 %v216_v4, %v215_v2  ;;  %v219_v9 = vld [vmem:[%s794_s3 + $0x70] sm:$0xff]  ;;  %v220_v10 = vld [vmem:[%s794_s3 + $0x78] sm:$0xff] }
  0x19   :  { %487 = vmatprep.subr.bf16.mxu0 %v573_v3  ;;  %507 = vmatpush3.bf16.msra.mxu1 %v506_v36  ;;  %v539_v11 = vpack.c.bf16 %v220_v10, %v219_v9 }
  0x1a   :  { %508 = vmatprep.subr.bf16.mxu1 %v573_v3 }
  0x1c   :  { %489 = vmatpush3.bf16.msra.mxu0 %v488_v39 }
  0x1d   :  { %490 = vmatprep.subr.bf16.mxu0 %v573_v3  ;;  %510 = vmatpush3.bf16.msra.mxu1 %v509_v42 }
  0x1e   :  { %511 = vmatprep.subr.bf16.mxu1 %v573_v3 }
  0x20   :  { %492 = vmatpush3.bf16.msra.mxu0 %v491_v45 }
  0x21   :  { %513 = vmatpush3.bf16.msra.mxu1 %v512_v46  ;;  %517 = vmatprep.subr.bf16.mxu0 %v573_v3 }
  0x22   :  { %514 = vmatprep.subr.bf16.mxu1 %v573_v3 }
  0x23   :  { %397 = vmatmul.mubr.f32.vlgmr.msra.gmra.mrb[0].mxu0 %v23_v49 }
  0x24   :  { %466 = vmatprep.mubr.msk.f32.mxu0 %vm574_vm0, %v575_v6  ;;  %519 = vmatpush3.bf16.msra.mxu0 %v518_v53  ;;  %v217_v6 = vld [vmem:[%s794_s3 + $0x60] sm:$0xff]  ;;  %s549_s3 = scalar_lea.vmem %s305_s0, 128 }
  0x25   :  { %516 = vmatpush3.bf16.msra.mxu1 %v515_v50  ;;  %520 = vmatprep.subr.bf16.mxu0 %v573_v3  ;;  %v536_v8 = vpack.c.bf16 %v218_v7, %v217_v6  ;;  %p550_p0 = scmp.ne.s32.totalorder %s305_s0, %s549_s3  ;;  %p555_p2 = scmp.lt.s32.totalorder %s549_s3, %s549_s3 }
  0x27   :  { %p556_p3 = por %p555_p2, %p554_p1 }
  0x28   :  { %432 = vmatmul.mubr.f32.vlgmr.msra.gmra.mrb[0].mxu1 %v23_v49  ;;  %522 = vmatpush3.bf16.msra.mxu0 %v521_v56 }
  0x29   :  { %523 = vmatprep.subr.bf16.mxu0 %v573_v3  ;;  %p557_p4 = pnand %p556_p3, %p550_p0 }
  0x2c   :  { %525 = vmatpush3.bf16.msra.mxu0 %v524_v59 }
  0x2d   :  { %526 = vmatprep.subr.bf16.mxu0 %v573_v3 }
  0x30   :  { %528 = vmatpush3.bf16.msra.mxu0 %v527_v62 }
  0x31   :  { %529 = vmatprep.subr.bf16.mxu0 %v573_v3 }
  0x34   :  { %531 = vmatpush3.bf16.msra.mxu0 %v530_v1 }
  0x35   :  { %532 = vmatprep.subr.bf16.mxu0 %v573_v3 }
  0x38   :  { %534 = vmatpush3.bf16.msra.mxu0 %v533_v5 }
  0x39   :  { %535 = vmatprep.subr.bf16.mxu0 %v573_v3 }
  0x3c   :  { %537 = vmatpush3.bf16.msra.mxu0 %v536_v8 }
  0x3d   :  { %538 = vmatprep.subr.bf16.mxu0 %v573_v3 }
  0x40   :  { %540 = vmatpush3.bf16.msra.mxu0 %v539_v11 }
  0xf6   :  { %v106_v12 = vpop.f32.mrb[0].mxu0 }
  0xf7   :  { %v312_v13 = vmul.f32 -1.442695, %v106_v12  ;;  %v398_v14 = vpop.f32.mrb[1].mxu0 }
  0xf9   :  { %545 = vpow2.f32 %v312_v13 }
  0xfb   :  { %v192_v15 = vpop.f32.mrb[0].mxu1 }
  0xfc   :  { %v433_v16 = vpop.f32.mrb[1].mxu1 }
 0x103   :  { %v546_v17 = vpop.eup %545 }
 0x104   :  { %v199_v18 = vadd.f32 1.0, %v546_v17 }
 0x106   :  { %547 = vrcp.f32 %v199_v18 }
 0x110   :  { %v548_v3 = vpop.eup %547 }
 0x111   :  { %v202_v19 = vmul.f32 %v548_v3, %v106_v12 }
 0x113   :  { %v203_v20 = vmul.f32 %v202_v19, %v192_v15 }
 0x115   :  { %467 = vmatmul.mubr.f32.vlgmr.msra.gmra.mrb[2].mxu0 %v203_v20 }
 0x1e8   :  { %v287_v21 = vpop.f32.mrb[2].mxu0 }
 0x1e9   :  { %297 = vst [vmem:[#allocation3] sm:$0xff] %v287_v21  ;;  %v468_v22 = vpop.f32.mrb[3].mxu0 }
 0x1ea   :  { %560 = shalt.err (!%p557_p4)
}
 0x1eb   :  { %s561_s7 = scalar_lea.hbm %s795_s4, 128 }
 0x1ec   :  { %p562_p5 = scmp.ne.s32.totalorder %s795_s4, %s561_s7  ;;  %p565_p6 = scmp.lt.u32.totalorder %s561_s7, %s795_s4 }
 0x1ee   :  { %p567_p7 = pnand %p565_p6, %p562_p5 }
 0x1f0   :  { %570 = shalt.err (!%p567_p7)
}
 0x1f1   :  { %307 = dma.vmem_to_hbm [thread:$0]  %s305_s0, 128, %s795_s4, [#allocation4]  }
 0x1f2   :  { %571 = dma.done.wait [#allocation4], 128  }
 0x1f3   :  { %572 = vsyncadd [#allocation4], 4294967168 }
 0x1f4   :  { %311 = vsyncpa [#allocation4], 1 }

</bundles_post_ra>
